<compile_context>
chip_gen: v5e
topology: v5e:2x2
jax: 0.10.0
libtpu: 0.0.40
codegen_flags: <defaults>
</compile_context>

<pallas_src>
import functools

import jax
import jax.numpy as jnp
from jax.experimental import pallas as pl
from jax.experimental.pallas import tpu as pltpu

_LANE = 128            # vreg lane width
_SUBLANES = 8          # vreg sublane count
_MAX_TILE_ROWS = 2048  # rows of 128 lanes per grid step (1 MiB f32 per input buffer)


def _round_up(x, m):
    return ((x + m - 1) // m) * m


def _pow(x, p):
    """x ** p, using integer_pow (VPU multiplies) when p is a small integer."""
    fp = float(p)
    if fp.is_integer() and 0 <= int(fp) <= 16:
        return jax.lax.integer_pow(x, int(fp))
    return x ** fp


def _focal_partials_kernel(labels_ref, output_ref, o_ref, *,
                           alfa, beta, eps, n_full_rows, rem_lanes, tile_rows):
    """Per grid-step (8, 128) lane partials:
       o_ref[0] = sum over valid, labels==1 of (1-out)^alfa * log(out+eps)
       o_ref[1] = count of valid labels==1
       o_ref[2] = sum over valid elems of (1-lab)^beta * out^alfa * log(1-out+eps)
    """
    i = pl.program_id(0)

    lab = labels_ref[...].astype(jnp.float32)
    out = output_ref[...].astype(jnp.float32)

    # Validity mask for ragged tail / partial last block (no wrapper-side padding).
    local_row = jax.lax.broadcasted_iota(jnp.int32, lab.shape, 0)
    lane = jax.lax.broadcasted_iota(jnp.int32, lab.shape, 1)
    g_row = i * tile_rows + local_row
    if rem_lanes:
        valid = (g_row < n_full_rows) | ((g_row == n_full_rows) & (lane < rem_lanes))
    else:
        valid = g_row < n_full_rows

    # Sanitize padded/garbage elements before any transcendental.
    out = jnp.where(valid, out, 0.5)
    lab = jnp.where(valid, lab, 0.0)
    validf = valid.astype(jnp.float32)

    posf = (lab == 1.0).astype(jnp.float32)

    pos_term = posf * _pow(1.0 - out, alfa) * jnp.log(out + eps)
    bg_term = validf * _pow(1.0 - lab, beta) * _pow(out, alfa) * jnp.log(1.0 - out + eps)

    # Fold (tile_rows, 128) -> (8, 128): tile-aligned reshape + leading-axis sum (VPU).
    def fold(x):
        return jnp.sum(x.reshape(tile_rows // _SUBLANES, _SUBLANES, _LANE), axis=0)

    o_ref[0] = fold(pos_term)
    o_ref[1] = fold(posf)
    o_ref[2] = fold(bg_term)


def total_loss(output, labels, *, alfa=2.0, beta=4.0, eps=1e-5):
    """Equivalent of TotalLoss(config).forward(output, labels)."""
    assert output.shape == labels.shape
    n = output.size

    flat_out = output.reshape(-1)
    flat_lab = labels.reshape(-1)

    # Only pad (at most 127 elems) when total size isn't a multiple of the lane width;
    # the padded elements are excluded in-kernel by the validity mask anyway.
    lane_pad = (-n) % _LANE
    if lane_pad:
        flat_out = jnp.pad(flat_out, (0, lane_pad))
        flat_lab = jnp.pad(flat_lab, (0, lane_pad))

    rows = (n + lane_pad) // _LANE
    out2d = flat_out.reshape(rows, _LANE)
    lab2d = flat_lab.reshape(rows, _LANE)

    tile_rows = min(_MAX_TILE_ROWS, _round_up(rows, _SUBLANES))
    num_blocks = pl.cdiv(rows, tile_rows)

    kernel = functools.partial(
        _focal_partials_kernel,
        alfa=alfa, beta=beta, eps=eps,
        n_full_rows=n // _LANE, rem_lanes=n % _LANE, tile_rows=tile_rows)

    partials = pl.pallas_call(
        kernel,
        out_shape=jax.ShapeDtypeStruct((num_blocks, 3, _SUBLANES, _LANE), jnp.float32),
        grid_spec=pltpu.PrefetchScalarGridSpec(
            num_scalar_prefetch=0,
            grid=(num_blocks,),
            in_specs=[
                pl.BlockSpec((tile_rows, _LANE), lambda i: (i, 0)),
                pl.BlockSpec((tile_rows, _LANE), lambda i: (i, 0)),
            ],
            out_specs=pl.BlockSpec((None, 3, _SUBLANES, _LANE),
                                   lambda i: (i, 0, 0, 0)),
        ),
        compiler_params=pltpu.CompilerParams(
            dimension_semantics=("parallel",)),
    )(lab2d, out2d)

    # Tiny final reduction in JAX: (num_blocks, 3, 8, 128) -> (3,)
    sums = jnp.sum(partials, axis=(0, 2, 3))
    pos_sum, pos_cnt, bg_sum = sums[0], sums[1], sums[2]

    # torch.mean over the boolean-masked positives; NaN if no positives (matches torch).
    loss_point = pos_sum / pos_cnt
    # torch.mean over all elements for the background term.
    loss_background = bg_sum / jnp.float32(n)

    return -1.0 * (loss_point + 5.0 * loss_background)


def _reference_total_loss(output, labels, alfa=2.0, beta=4.0, eps=1e-5):
    """Pure-JAX reference mirroring the PyTorch code."""
    out = output.astype(jnp.float32)
    lab = labels.astype(jnp.float32)
    pos_mask = lab == 1.0
    pos_term = (1.0 - out) ** alfa * jnp.log(out + eps)
    loss_point = jnp.sum(jnp.where(pos_mask, pos_term, 0.0)) / jnp.sum(
        pos_mask.astype(jnp.float32))
    bg_term = (1.0 - lab) ** beta * out ** alfa * jnp.log(1.0 - out + eps)
    loss_background = jnp.mean(bg_term)
    return -1.0 * (loss_point + 5.0 * loss_background)


if __name__ == "__main__":
    key = jax.random.PRNGKey(0)
    k1, k2 = jax.random.split(key)

    B, C, H, W = 2, 4, 16, 16  # NCHW, same shape for output and labels

    # output: model heatmap in (0, 1)
    output = jax.nn.sigmoid(jax.random.normal(k1, (B, C, H, W), dtype=jnp.float32))
    # labels: sparse binary keypoint map with at least one positive
    labels = (jax.random.uniform(k2, (B, C, H, W)) < 0.05).astype(jnp.float32)
    labels = labels.at[0, 0, 3, 7].set(1.0)

    loss = total_loss(output, labels, alfa=2.0, beta=4.0, eps=1e-5)
    loss = jax.block_until_ready(loss)

    ref = _reference_total_loss(output, labels)
    assert jnp.allclose(loss, ref, rtol=1e-5, atol=1e-5), (loss, ref)

    print("KERNEL_OK")
</pallas_src>

<mosaic_0001>
module attributes {stable_mosaic.version = 11 : i64} {
  func.func @_focal_partials_kernel(%arg0: i32, %arg1: memref<16x128xf32, #tpu.memory_space<vmem>>, %arg2: memref<16x128xf32, #tpu.memory_space<vmem>>, %arg3: memref<1x3x8x128xf32, #tpu.memory_space<vmem>>) attributes {dimension_semantics = [#tpu.dimension_semantics<parallel>], iteration_bounds = array<i64: 1>, scalar_prefetch = 0 : i64, scratch_operands = 0 : i64, tpu.core_type = #tpu.core_type<tc>, window_params = [{transform_indices = @transform_0, window_bounds = array<i64: 16, 128>}, {transform_indices = @transform_1, window_bounds = array<i64: 16, 128>}, {transform_indices = @transform_2, window_bounds = array<i64: 1, 3, 8, 128>}]} {
    %c0 = arith.constant 0 : index
    %c0_0 = arith.constant 0 : index
    %0 = vector.load %arg1[%c0, %c0_0] : memref<16x128xf32, #tpu.memory_space<vmem>>, vector<16x128xf32>
    %c0_1 = arith.constant 0 : index
    %c0_2 = arith.constant 0 : index
    %1 = vector.load %arg2[%c0_1, %c0_2] : memref<16x128xf32, #tpu.memory_space<vmem>>, vector<16x128xf32>
    %2 = tpu.iota {dimensions = array<i32: 0>} : vector<16x128xi32>
    %c16_i32 = arith.constant 16 : i32
    %3 = arith.muli %arg0, %c16_i32 : i32
    %4 = vector.broadcast %3 : i32 to vector<16x128xi32>
    %5 = arith.addi %4, %2 : vector<16x128xi32>
    %c16_i32_3 = arith.constant 16 : i32
    %6 = vector.broadcast %c16_i32_3 : i32 to vector<16x128xi32>
    %7 = arith.cmpi slt, %5, %6 : vector<16x128xi32>
    %cst = arith.constant 5.000000e-01 : f32
    %8 = vector.broadcast %cst : f32 to vector<16x128xf32>
    %9 = arith.select %7, %1, %8 : vector<16x128xi1>, vector<16x128xf32>
    %cst_4 = arith.constant 0.000000e+00 : f32
    %10 = vector.broadcast %cst_4 : f32 to vector<16x128xf32>
    %11 = arith.select %7, %0, %10 : vector<16x128xi1>, vector<16x128xf32>
    %12 = arith.extui %7 : vector<16x128xi1> to vector<16x128xi32>
    %13 = arith.sitofp %12 : vector<16x128xi32> to vector<16x128xf32>
    %cst_5 = arith.constant 1.000000e+00 : f32
    %14 = vector.broadcast %cst_5 : f32 to vector<16x128xf32>
    %15 = arith.cmpf oeq, %11, %14 : vector<16x128xf32>
    %16 = arith.extui %15 : vector<16x128xi1> to vector<16x128xi32>
    %17 = arith.sitofp %16 : vector<16x128xi32> to vector<16x128xf32>
    %cst_6 = arith.constant 1.000000e+00 : f32
    %18 = vector.broadcast %cst_6 : f32 to vector<16x128xf32>
    %19 = arith.subf %18, %9 : vector<16x128xf32>
    %20 = arith.mulf %19, %19 : vector<16x128xf32>
    %21 = arith.mulf %17, %20 : vector<16x128xf32>
    %cst_7 = arith.constant 9.99999974E-6 : f32
    %22 = vector.broadcast %cst_7 : f32 to vector<16x128xf32>
    %23 = arith.addf %9, %22 : vector<16x128xf32>
    %24 = math.log %23 : vector<16x128xf32>
    %25 = arith.mulf %21, %24 : vector<16x128xf32>
    %cst_8 = arith.constant 1.000000e+00 : f32
    %26 = vector.broadcast %cst_8 : f32 to vector<16x128xf32>
    %27 = arith.subf %26, %11 : vector<16x128xf32>
    %28 = arith.mulf %27, %27 : vector<16x128xf32>
    %29 = arith.mulf %28, %28 : vector<16x128xf32>
    %30 = arith.mulf %13, %29 : vector<16x128xf32>
    %31 = arith.mulf %9, %9 : vector<16x128xf32>
    %32 = arith.mulf %30, %31 : vector<16x128xf32>
    %cst_9 = arith.constant 1.000000e+00 : f32
    %33 = vector.broadcast %cst_9 : f32 to vector<16x128xf32>
    %34 = arith.subf %33, %9 : vector<16x128xf32>
    %cst_10 = arith.constant 9.99999974E-6 : f32
    %35 = vector.broadcast %cst_10 : f32 to vector<16x128xf32>
    %36 = arith.addf %34, %35 : vector<16x128xf32>
    %37 = math.log %36 : vector<16x128xf32>
    %38 = arith.mulf %32, %37 : vector<16x128xf32>
    %39 = vector.shape_cast %25 : vector<16x128xf32> to vector<2x8x128xf32>
    %cst_11 = arith.constant dense<0.000000e+00> : vector<8x128xf32>
    %40 = vector.multi_reduction <add>, %39, %cst_11 [0] : vector<2x8x128xf32> to vector<8x128xf32>
    %c0_12 = arith.constant 0 : index
    %c0_13 = arith.constant 0 : index
    %c0_14 = arith.constant 0 : index
    %c0_15 = arith.constant 0 : index
    %41 = vector.load %arg3[%c0_12, %c0_13, %c0_14, %c0_15] : memref<1x3x8x128xf32, #tpu.memory_space<vmem>>, vector<1x1x8x128xf32>
    %42 = vector.shape_cast %41 : vector<1x1x8x128xf32> to vector<8x128xf32>
    %43 = vector.shape_cast %40 : vector<8x128xf32> to vector<1x1x8x128xf32>
    tpu.vector_store %arg3[%c0_12, %c0_13, %c0_14, %c0_15], %43 {strides = array<i32>} : memref<1x3x8x128xf32, #tpu.memory_space<vmem>>, vector<1x1x8x128xf32>,
    %44 = vector.shape_cast %17 : vector<16x128xf32> to vector<2x8x128xf32>
    %cst_16 = arith.constant dense<0.000000e+00> : vector<8x128xf32>
    %45 = vector.multi_reduction <add>, %44, %cst_16 [0] : vector<2x8x128xf32> to vector<8x128xf32>
    %c0_17 = arith.constant 0 : index
    %c1 = arith.constant 1 : index
    %c0_18 = arith.constant 0 : index
    %c0_19 = arith.constant 0 : index
    %46 = vector.load %arg3[%c0_17, %c1, %c0_18, %c0_19] : memref<1x3x8x128xf32, #tpu.memory_space<vmem>>, vector<1x1x8x128xf32>
    %47 = vector.shape_cast %46 : vector<1x1x8x128xf32> to vector<8x128xf32>
    %48 = vector.shape_cast %45 : vector<8x128xf32> to vector<1x1x8x128xf32>
    tpu.vector_store %arg3[%c0_17, %c1, %c0_18, %c0_19], %48 {strides = array<i32>} : memref<1x3x8x128xf32, #tpu.memory_space<vmem>>, vector<1x1x8x128xf32>,
    %49 = vector.shape_cast %38 : vector<16x128xf32> to vector<2x8x128xf32>
    %cst_20 = arith.constant dense<0.000000e+00> : vector<8x128xf32>
    %50 = vector.multi_reduction <add>, %49, %cst_20 [0] : vector<2x8x128xf32> to vector<8x128xf32>
    %c0_21 = arith.constant 0 : index
    %c2 = arith.constant 2 : index
    %c0_22 = arith.constant 0 : index
    %c0_23 = arith.constant 0 : index
    %51 = vector.load %arg3[%c0_21, %c2, %c0_22, %c0_23] : memref<1x3x8x128xf32, #tpu.memory_space<vmem>>, vector<1x1x8x128xf32>
    %52 = vector.shape_cast %51 : vector<1x1x8x128xf32> to vector<8x128xf32>
    %53 = vector.shape_cast %50 : vector<8x128xf32> to vector<1x1x8x128xf32>
    tpu.vector_store %arg3[%c0_21, %c2, %c0_22, %c0_23], %53 {strides = array<i32>} : memref<1x3x8x128xf32, #tpu.memory_space<vmem>>, vector<1x1x8x128xf32>,
    return
  }
  func.func @transform_0(%arg0: i32) -> (i32, i32) {
    %c0_i32 = arith.constant 0 : i32
    %c0_i32_0 = arith.constant 0 : i32
    return %arg0, %c0_i32 : i32, i32
  }
  func.func @transform_1(%arg0: i32) -> (i32, i32) {
    %c0_i32 = arith.constant 0 : i32
    %c0_i32_0 = arith.constant 0 : i32
    return %arg0, %c0_i32 : i32, i32
  }
  func.func @transform_2(%arg0: i32) -> (i32, i32, i32, i32) {
    %c0_i32 = arith.constant 0 : i32
    %c0_i32_0 = arith.constant 0 : i32
    %c0_i32_1 = arith.constant 0 : i32
    %c0_i32_2 = arith.constant 0 : i32
    return %arg0, %c0_i32, %c0_i32_0, %c0_i32_1 : i32, i32, i32, i32
  }
}

</mosaic_0001>

<bundles_post_ra>
// kernel: tpu_custom_call.1
= control target key start
LH: loop header
LB: loop body
LE: loop exit
PB: predicated region body
PF: predicated region fallthrough
CT: control target
= control target key end

     0   :  { %7 = vsyncpa [#allocation3], 0  ;;  %s266_s0 = inlined_call_operand.hbm [shape: f32[16,128], index: 0, kind: input, shape index: {}]   ;;  %s267_s1 = inlined_call_operand.hbm [shape: f32[16,128], index: 1, kind: input, shape index: {}]   ;;  %s268_s2 = inlined_call_operand.hbm [shape: f32[1,3,8,128], index: 2, kind: output, shape index: {}]  }
   0x1   :  { %8 = vsyncpa [#allocation6], 0 }
   0x2   :  { %9 = vsyncpa [#allocation4], 0  ;;  %s14_s11 = sshll.u32 %s266_s0, 4  ;;  %s227_s12 = smov [#allocation2]   ;;  %s15_s11 = int_to_ptr.hbm [resolvable:$true] %s14_s11 }
   0x3   :  { %s16_s13 = sshll.u32 %s227_s12, 4  ;;  %s27_s16 = sshll.u32 %s267_s1, 4  ;;  %s17_s13 = int_to_ptr.vmem [resolvable:$true] %s16_s13  ;;  %s28_s16 = int_to_ptr.hbm [resolvable:$true] %s27_s16 }
   0x4   :  { %s228_s17 = smov 128   ;;  %s229_s18 = smov 8  }
   0x5   :  { %22 = dma.hbm_to_vmem [thread:$0]  %s15_s11, 256, %s17_s13, [#allocation3], %s228_s17, %s228_s17, %s229_s18  }
   0x6   :  { %s230_s19 = smov [#allocation5]  }
   0x7   :  { %s29_s20 = sshll.u32 %s230_s19, 4  ;;  %s30_s20 = int_to_ptr.vmem [resolvable:$true] %s29_s20 }
   0x8   :  { %35 = dma.hbm_to_vmem [thread:$0]  %s28_s16, 256, %s30_s20, [#allocation6], %s228_s17, %s228_s17, %s229_s18  }
   0x9   :  { %221 = dma.done.wait [#allocation3], 256  }
   0xa   :  { %222 = vsyncadd [#allocation3], 4294967040 }
   0xb   :  { %223 = dma.done.wait [#allocation6], 256  }
   0xc   :  { %224 = vsyncadd [#allocation6], 4294967040  ;;  %v44_v0 = vld [vmem:[#allocation2] sm:$0xff]  ;;  %v45_v1 = vld [vmem:[#allocation2 + $0x8] sm:$0xff]  ;;  %v231_v6 = vmov 0.0   ;;  %s232_s0 = smov [#allocation7]  }
   0xd   :  { %v46_v2 = vld [vmem:[#allocation5] sm:$0xff]  ;;  %v47_v3 = vld [vmem:[#allocation5 + $0x8] sm:$0xff]  ;;  %vm65_vm0 = vcmp.eq.f32.partialorder %v44_v0, 1.0  ;;  %vm66_vm1 = vcmp.eq.f32.partialorder %v45_v1, 1.0  ;;  %v85_v12 = vsub.f32 1.0, %v44_v0  ;;  %v86_v14 = vsub.f32 1.0, %v45_v1 }
   0xe   :  { %v71_v4 = vsub.f32 1.0, %v46_v2  ;;  %v77_v5 = vadd.f32 1e-05, %v46_v2  ;;  %v133_v7 = vsel %vm65_vm0, 1.0, %v231_v6  ;;  %v134_v8 = vsel %vm66_vm1, 1.0, %v231_v6  ;;  %s117_s1 = sshll.u32 %s232_s0, 4  ;;  %s118_s1 = int_to_ptr.vmem [resolvable:$true] %s117_s1 }
   0xf   :  { %v72_v9 = vsub.f32 1.0, %v47_v3  ;;  %v78_v10 = vadd.f32 1e-05, %v47_v3  ;;  %v107_v11 = vadd.f32 %v134_v8, %v133_v7  ;;  %v87_v16 = vmul.f32 %v85_v12, %v85_v12  ;;  %s119_s23 = sshll.u32 %s268_s2, 4  ;;  %s120_s23 = int_to_ptr.hbm [resolvable:$true] %s119_s23 }
  0x10   :  { %141 = vlog2.f32 %v77_v5  ;;  %v73_v13 = vmul.f32 %v71_v4, %v71_v4  ;;  %v97_v17 = vadd.f32 1e-05, %v71_v4  ;;  %v88_v18 = vmul.f32 %v86_v14, %v86_v14 }
  0x11   :  { %143 = vlog2.f32 %v78_v10  ;;  %v74_v15 = vmul.f32 %v72_v9, %v72_v9  ;;  %109 = vst [vmem:[#allocation7 + $0x8] sm:$0xff] %v107_v11  ;;  %v98_v19 = vadd.f32 1e-05, %v72_v9  ;;  %v89_v21 = vmul.f32 %v87_v16, %v87_v16 }
  0x12   :  { %145 = vlog2.f32 %v97_v17  ;;  %v75_v20 = vmul.f32 %v133_v7, %v73_v13  ;;  %v93_v22 = vmul.f32 %v46_v2, %v46_v2  ;;  %v90_v25 = vmul.f32 %v88_v18, %v88_v18 }
  0x13   :  { %147 = vlog2.f32 %v98_v19  ;;  %v76_v24 = vmul.f32 %v134_v8, %v74_v15  ;;  %v94_v26 = vmul.f32 %v47_v3, %v47_v3 }
  0x14   :  { %v95_v31 = vmul.f32 %v93_v22, %v89_v21 }
  0x15   :  { %v96_v34 = vmul.f32 %v94_v26, %v90_v25 }
  0x16   :  { %v142_v23 = vpop.eup %141 }
  0x17   :  { %v144_v27 = vpop.eup %143  ;;  %v80_v28 = vmul.f32 0.6931472, %v142_v23 }
  0x18   :  { %v82_v29 = vmul.f32 0.6931472, %v144_v27  ;;  %v146_v32 = vpop.eup %145 }
  0x19   :  { %v83_v30 = vmul.f32 %v80_v28, %v75_v20  ;;  %v148_v35 = vpop.eup %147  ;;  %v100_v36 = vmul.f32 0.6931472, %v146_v32 }
  0x1a   :  { %v84_v33 = vmul.f32 %v82_v29, %v76_v24  ;;  %v102_v38 = vmul.f32 0.6931472, %v148_v35 }
  0x1b   :  { %v103_v39 = vmul.f32 %v100_v36, %v95_v31 }
  0x1c   :  { %v105_v37 = vadd.f32 %v84_v33, %v83_v30  ;;  %v104_v40 = vmul.f32 %v102_v38, %v96_v34 }
  0x1e   :  { %106 = vst [vmem:[#allocation7] sm:$0xff] %v105_v37  ;;  %v110_v41 = vadd.f32 %v104_v40, %v103_v39 }
  0x20   :  { %112 = vst [vmem:[#allocation7 + $0x10] sm:$0xff] %v110_v41 }
  0x21   :  { %125 = dma.vmem_to_hbm [thread:$0]  %s118_s1, 384, %s120_s23, [#allocation4], %s228_s17, %s228_s17, %s229_s18  }
  0x22   :  { %225 = dma.done.wait [#allocation4], 384  }
  0x23   :  { %226 = vsyncadd [#allocation4], 4294966912 }
  0x24   :  { %130 = vsyncpa [#allocation3], 1 }
  0x25   :  { %131 = vsyncpa [#allocation6], 1 }
  0x26   :  { %132 = vsyncpa [#allocation4], 1 }

</bundles_post_ra>
